<compile_context>
chip_gen: v7x
topology: tpu7x:2x2x1
jax: 0.10.0
libtpu: 0.0.40
codegen_flags: <defaults>
</compile_context>

<pallas_src>
import jax
import jax.numpy as jnp
from jax.experimental import pallas as pl
from jax.experimental.pallas import tpu as pltpu


def _make_mlp_kernel(bf16_elementwise: bool):
    def mlp_kernel(x_ref, w1_ref, b1_ref, w2_ref, b2_ref, w3_ref, b3_ref, oT_ref):
        # x_ref: [TM, D] f32 block straight from HBM (no wrapper transpose/cast).
        # Transpose to batch-on-lanes on the otherwise-idle XLU, cast for the MXU.
        xT = x_ref[...].T.astype(jnp.bfloat16)                 # [D, TM] bf16

        # fc1 + relu -> [64, TM]
        h = jnp.dot(w1_ref[...], xT, preferred_element_type=jnp.float32)
        if bf16_elementwise:
            h = jnp.maximum(h.astype(jnp.bfloat16) + b1_ref[...], 0)
        else:
            h = jnp.maximum(h + b1_ref[...], 0.0).astype(jnp.bfloat16)

        # fc2 + relu -> [32, TM]
        h = jnp.dot(w2_ref[...], h, preferred_element_type=jnp.float32)
        if bf16_elementwise:
            h = jnp.maximum(h.astype(jnp.bfloat16) + b2_ref[...], 0)
        else:
            h = jnp.maximum(h + b2_ref[...], 0.0).astype(jnp.bfloat16)

        # fc3 -> [2, TM] f32, lane-dense store
        h = jnp.dot(w3_ref[...], h, preferred_element_type=jnp.float32)
        oT_ref[...] = (h + b3_ref[...]).astype(oT_ref.dtype)

    return mlp_kernel


def _mlp_xla(x, params):
    """Plain XLA path (also the f32 reference)."""
    a = jnp.maximum(x @ params["w1"] + params["b1"], 0.0)
    b = jnp.maximum(a @ params["w2"] + params["b2"], 0.0)
    return b @ params["w3"] + params["b3"]


def _round_up(n, m):
    return ((n + m - 1) // m) * m


def _device_kind():
    try:
        return jax.devices()[0].device_kind.lower()
    except Exception:
        return ""


def mlp_forward(x, params, *, min_pallas_rows=256):
    """x: [B, data_dim] float32. params: dict of w1,b1,w2,b2,w3,b3 (weights [in,out])."""
    B, D = x.shape

    # Tiny batches: per-call Pallas overhead dwarfs the work; let XLA fuse it.
    if B < min_pallas_rows:
        return _mlp_xla(x, params)

    kind = _device_kind()
    is_v7 = "v7" in kind
    older_gen = any(v in kind for v in ("v2", "v3", "v4", "v5"))
    bf16_elem = not older_gen            # v6e/v7x have bf16 VALUs; v5e keeps f32 elementwise

    # Large tiles amortize the ~0.35 us per-grid-step overhead (the dominant cost
    # at small tiles); keep >=4 grid steps so v7x's 2 TCs load-balance and padding
    # stays bounded. v7x has only 64 MiB physical VMEM -> smaller cap.
    tm_max = 8192 if is_v7 else 32768
    tm = min(tm_max, max(128, _round_up(-(-B // 4), 128)))
    B_pad = _round_up(B, tm)
    xp = x.astype(jnp.float32)
    if B_pad != B:
        xp = jnp.pad(xp, ((0, B_pad - B), (0, 0)))

    # Weights as [out, in] bf16 (VMEM-resident), biases as column vectors.
    elem_dtype = jnp.bfloat16 if bf16_elem else jnp.float32
    w1t = params["w1"].T.astype(jnp.bfloat16)            # [64, D]
    w2t = params["w2"].T.astype(jnp.bfloat16)            # [32, 64]
    w3t = params["w3"].T.astype(jnp.bfloat16)            # [2, 32]
    b1c = params["b1"].reshape(-1, 1).astype(elem_dtype)
    b2c = params["b2"].reshape(-1, 1).astype(elem_dtype)
    b3c = params["b3"].reshape(-1, 1).astype(jnp.float32)

    grid = (B_pad // tm,)
    const = lambda shape: pl.BlockSpec(shape, lambda i: (0, 0))  # resident arrays

    weight_bytes = sum(a.size * a.dtype.itemsize
                       for a in (w1t, b1c, w2t, b2c, w3t, b3c))

    # Rough per-step VMEM need: double-buffered f32 x tile (+ out) plus the
    # f32/bf16 intermediates (~ tm * (8*D + 768) bytes), plus headroom.
    est_scratch = tm * (8 * D + 768) + (2 << 20)
    vmem_cap = (48 << 20) if is_v7 else (100 << 20)      # stay below 64 / 128 MiB physical
    vmem_limit = int(min(vmem_cap, max(32 << 20, 2 * est_scratch)))

    oT = pl.pallas_call(
        _make_mlp_kernel(bf16_elem),
        out_shape=jax.ShapeDtypeStruct((2, B_pad), jnp.float32),
        grid=grid,
        in_specs=[
            # x stream: only array tiled over the grid; default double-buffering
            # is enough once tiles are large.
            pl.BlockSpec((tm, D), lambda i: (i, 0)),
            const(w1t.shape), const(b1c.shape),
            const(w2t.shape), const(b2c.shape),
            const(w3t.shape), const(b3c.shape),
        ],
        out_specs=pl.BlockSpec((2, tm), lambda i: (0, i)),
        compiler_params=pltpu.CompilerParams(
            dimension_semantics=("parallel",),            # v7x: shard batch over 2 TCs
            vmem_limit_bytes=vmem_limit),
        cost_estimate=pl.CostEstimate(
            flops=2 * B_pad * (D * 64 + 64 * 32 + 32 * 2),
            transcendentals=0,
            bytes_accessed=xp.size * 4 + 2 * B_pad * 4 + weight_bytes),
    )(xp, w1t, b1c, w2t, b2c, w3t, b3c)

    # Back to the module's [B, 2] layout (tiny [2, B] transpose).
    return oT[:, :B].T


def init_params(key, data_dim):
    """Deterministic init mirroring nn.Linear default (uniform +/-1/sqrt(fan_in)).
    Weights stored as [in, out]."""
    dims = [(data_dim, 64), (64, 32), (32, 2)]
    params = {}
    for idx, (fan_in, fan_out) in enumerate(dims, start=1):
        key, kw, kb = jax.random.split(key, 3)
        bound = 1.0 / jnp.sqrt(jnp.float32(fan_in))
        params[f"w{idx}"] = jax.random.uniform(
            kw, (fan_in, fan_out), jnp.float32, minval=-bound, maxval=bound)
        params[f"b{idx}"] = jax.random.uniform(
            kb, (fan_out,), jnp.float32, minval=-bound, maxval=bound)
    return params


def mlp_reference(x, params):
    return _mlp_xla(x, params)


if __name__ == "__main__":
    key = jax.random.PRNGKey(0)
    data_dim = 32
    batch = 1024          # exercises the tiled Pallas path (grid of 4 x 256-row tiles)

    kx, kp = jax.random.split(key)
    x = jax.random.normal(kx, (batch, data_dim), jnp.float32)
    params = init_params(kp, data_dim)

    out = jax.block_until_ready(mlp_forward(x, params))
    ref = mlp_reference(x, params)

    assert out.shape == (batch, 2), out.shape
    # bf16 MXU inputs / bf16 hidden activations with f32 accumulation -> compare
    # to the f32 reference with a correspondingly relaxed tolerance.
    assert jnp.allclose(out, ref, atol=3e-2, rtol=3e-2), "mismatch vs reference"

    # Tiny-batch path dispatches to plain XLA (Pallas overhead dominates there).
    x_small = x[:8]
    out_small = jax.block_until_ready(mlp_forward(x_small, params))
    assert jnp.allclose(out_small, mlp_reference(x_small, params),
                        atol=1e-5, rtol=1e-5), "small-batch mismatch"

    print("KERNEL_OK")
</pallas_src>

<mosaic_0001>
module attributes {stable_mosaic.version = 11 : i64} {
  func.func @mlp_kernel(%arg0: i32, %arg1: memref<256x32xf32, #tpu.memory_space<vmem>>, %arg2: memref<64x32xbf16, #tpu.memory_space<vmem>>, %arg3: memref<64x1xbf16, #tpu.memory_space<vmem>>, %arg4: memref<32x64xbf16, #tpu.memory_space<vmem>>, %arg5: memref<32x1xbf16, #tpu.memory_space<vmem>>, %arg6: memref<2x32xbf16, #tpu.memory_space<vmem>>, %arg7: memref<2x1xf32, #tpu.memory_space<vmem>>, %arg8: memref<2x256xf32, #tpu.memory_space<vmem>>) attributes {dimension_semantics = [#tpu.dimension_semantics<parallel>], iteration_bounds = array<i64: 4>, scalar_prefetch = 0 : i64, scratch_operands = 0 : i64, tpu.core_type = #tpu.core_type<tc>, window_params = [{transform_indices = @transform_0, window_bounds = array<i64: 256, 32>}, {pipeline_mode = #tpu.pipeline_mode<synchronous>, transform_indices = @transform_1, window_bounds = array<i64: 64, 32>}, {pipeline_mode = #tpu.pipeline_mode<synchronous>, transform_indices = @transform_2, window_bounds = array<i64: 64, 1>}, {pipeline_mode = #tpu.pipeline_mode<synchronous>, transform_indices = @transform_3, window_bounds = array<i64: 32, 64>}, {pipeline_mode = #tpu.pipeline_mode<synchronous>, transform_indices = @transform_4, window_bounds = array<i64: 32, 1>}, {pipeline_mode = #tpu.pipeline_mode<synchronous>, transform_indices = @transform_5, window_bounds = array<i64: 2, 32>}, {pipeline_mode = #tpu.pipeline_mode<synchronous>, transform_indices = @transform_6, window_bounds = array<i64: 2, 1>}, {transform_indices = @transform_7, window_bounds = array<i64: 2, 256>}]} {
    %c0 = arith.constant 0 : index
    %c0_0 = arith.constant 0 : index
    %0 = vector.load %arg1[%c0, %c0_0] : memref<256x32xf32, #tpu.memory_space<vmem>>, vector<256x32xf32>
    %1 = tpu.transpose %0, [1, 0] : vector<256x32xf32> -> vector<32x256xf32>
    %2 = arith.truncf %1 : vector<32x256xf32> to vector<32x256xbf16>
    %c0_1 = arith.constant 0 : index
    %c0_2 = arith.constant 0 : index
    %3 = vector.load %arg2[%c0_1, %c0_2] : memref<64x32xbf16, #tpu.memory_space<vmem>>, vector<64x32xbf16>
    %cst = arith.constant dense<0.000000e+00> : vector<64x256xf32>
    %4 = tpu.matmul %3, %2, %cst {dimension_numbers = #tpu.dot_dimension_numbers<[1], [0], [0], [1], [0, 0, 1, 1], [], []>} : vector<64x32xbf16>, vector<32x256xbf16>, vector<64x256xf32> -> vector<64x256xf32>
    %5 = arith.truncf %4 : vector<64x256xf32> to vector<64x256xbf16>
    %c0_3 = arith.constant 0 : index
    %c0_4 = arith.constant 0 : index
    %6 = vector.load %arg3[%c0_3, %c0_4] : memref<64x1xbf16, #tpu.memory_space<vmem>>, vector<64x1xbf16>
    %7 = vector.broadcast %6 : vector<64x1xbf16> to vector<64x256xbf16>
    %8 = arith.addf %5, %7 : vector<64x256xbf16>
    %cst_5 = arith.constant 0.000000e+00 : bf16
    %9 = vector.broadcast %cst_5 : bf16 to vector<64x256xbf16>
    %10 = arith.maximumf %8, %9 : vector<64x256xbf16>
    %c0_6 = arith.constant 0 : index
    %c0_7 = arith.constant 0 : index
    %11 = vector.load %arg4[%c0_6, %c0_7] : memref<32x64xbf16, #tpu.memory_space<vmem>>, vector<32x64xbf16>
    %cst_8 = arith.constant dense<0.000000e+00> : vector<32x256xf32>
    %12 = tpu.matmul %11, %10, %cst_8 {dimension_numbers = #tpu.dot_dimension_numbers<[1], [0], [0], [1], [0, 0, 1, 1], [], []>} : vector<32x64xbf16>, vector<64x256xbf16>, vector<32x256xf32> -> vector<32x256xf32>
    %13 = arith.truncf %12 : vector<32x256xf32> to vector<32x256xbf16>
    %c0_9 = arith.constant 0 : index
    %c0_10 = arith.constant 0 : index
    %14 = vector.load %arg5[%c0_9, %c0_10] : memref<32x1xbf16, #tpu.memory_space<vmem>>, vector<32x1xbf16>
    %15 = vector.broadcast %14 : vector<32x1xbf16> to vector<32x256xbf16>
    %16 = arith.addf %13, %15 : vector<32x256xbf16>
    %cst_11 = arith.constant 0.000000e+00 : bf16
    %17 = vector.broadcast %cst_11 : bf16 to vector<32x256xbf16>
    %18 = arith.maximumf %16, %17 : vector<32x256xbf16>
    %c0_12 = arith.constant 0 : index
    %c0_13 = arith.constant 0 : index
    %19 = vector.load %arg6[%c0_12, %c0_13] : memref<2x32xbf16, #tpu.memory_space<vmem>>, vector<2x32xbf16>
    %cst_14 = arith.constant dense<0.000000e+00> : vector<2x256xf32>
    %20 = tpu.matmul %19, %18, %cst_14 {dimension_numbers = #tpu.dot_dimension_numbers<[1], [0], [0], [1], [0, 0, 1, 1], [], []>} : vector<2x32xbf16>, vector<32x256xbf16>, vector<2x256xf32> -> vector<2x256xf32>
    %c0_15 = arith.constant 0 : index
    %c0_16 = arith.constant 0 : index
    %21 = vector.load %arg7[%c0_15, %c0_16] : memref<2x1xf32, #tpu.memory_space<vmem>>, vector<2x1xf32>
    %22 = vector.broadcast %21 : vector<2x1xf32> to vector<2x256xf32>
    %23 = arith.addf %20, %22 : vector<2x256xf32>
    %c0_17 = arith.constant 0 : index
    %c0_18 = arith.constant 0 : index
    %24 = vector.load %arg8[%c0_17, %c0_18] : memref<2x256xf32, #tpu.memory_space<vmem>>, vector<2x256xf32>
    tpu.vector_store %arg8[%c0_17, %c0_18], %23 {strides = array<i32>} : memref<2x256xf32, #tpu.memory_space<vmem>>, vector<2x256xf32>,
    return
  }
  func.func @transform_0(%arg0: i32) -> (i32, i32) {
    %c0_i32 = arith.constant 0 : i32
    %c0_i32_0 = arith.constant 0 : i32
    return %arg0, %c0_i32 : i32, i32
  }
  func.func @transform_1(%arg0: i32) -> (i32, i32) {
    %c0_i32 = arith.constant 0 : i32
    %c0_i32_0 = arith.constant 0 : i32
    %c0_i32_1 = arith.constant 0 : i32
    return %c0_i32, %c0_i32_0 : i32, i32
  }
  func.func @transform_2(%arg0: i32) -> (i32, i32) {
    %c0_i32 = arith.constant 0 : i32
    %c0_i32_0 = arith.constant 0 : i32
    %c0_i32_1 = arith.constant 0 : i32
    return %c0_i32, %c0_i32_0 : i32, i32
  }
  func.func @transform_3(%arg0: i32) -> (i32, i32) {
    %c0_i32 = arith.constant 0 : i32
    %c0_i32_0 = arith.constant 0 : i32
    %c0_i32_1 = arith.constant 0 : i32
    return %c0_i32, %c0_i32_0 : i32, i32
  }
  func.func @transform_4(%arg0: i32) -> (i32, i32) {
    %c0_i32 = arith.constant 0 : i32
    %c0_i32_0 = arith.constant 0 : i32
    %c0_i32_1 = arith.constant 0 : i32
    return %c0_i32, %c0_i32_0 : i32, i32
  }
  func.func @transform_5(%arg0: i32) -> (i32, i32) {
    %c0_i32 = arith.constant 0 : i32
    %c0_i32_0 = arith.constant 0 : i32
    %c0_i32_1 = arith.constant 0 : i32
    return %c0_i32, %c0_i32_0 : i32, i32
  }
  func.func @transform_6(%arg0: i32) -> (i32, i32) {
    %c0_i32 = arith.constant 0 : i32
    %c0_i32_0 = arith.constant 0 : i32
    %c0_i32_1 = arith.constant 0 : i32
    return %c0_i32, %c0_i32_0 : i32, i32
  }
  func.func @transform_7(%arg0: i32) -> (i32, i32) {
    %c0_i32 = arith.constant 0 : i32
    %c0_i32_0 = arith.constant 0 : i32
    return %c0_i32, %arg0 : i32, i32
  }
}

</mosaic_0001>

<bundles_post_ra>
// kernel: tpu_custom_call.1
= control target key start
LH: loop header
LB: loop body
LE: loop exit
PB: predicated region body
PF: predicated region fallthrough
CT: control target
= control target key end

     0   :  { %12 = vsyncpa [#allocation3], 0  ;;  %s1408_s0 = inlined_call_operand.vmem [shape: f32[1024,32], index: 0, kind: input, shape index: {}]   ;;  %s1409_s1 = inlined_call_operand.vmem [shape: bf16[64,32], index: 1, kind: input, shape index: {}]   ;;  %s1410_s2 = inlined_call_operand.vmem [shape: bf16[64,1], index: 2, kind: input, shape index: {}]   ;;  %s1411_s3 = inlined_call_operand.vmem [shape: bf16[32,64], index: 3, kind: input, shape index: {}]   ;;  %s1412_s4 = inlined_call_operand.vmem [shape: bf16[32,1], index: 4, kind: input, shape index: {}]   ;;  %s1413_s5 = inlined_call_operand.vmem [shape: bf16[2,32], index: 5, kind: input, shape index: {}]   ;;  %s1414_s6 = inlined_call_operand.vmem [shape: f32[2,1], index: 6, kind: input, shape index: {}]   ;;  %s1415_s7 = inlined_call_operand.hbm [shape: f32[2,1024], index: 7, kind: output, shape index: {}]  }
   0x1   :  { %14 = vsyncpa [#allocation3 + $0x1], 0  ;;  %s1175_s24 = smov 0   ;;  %s1177_s25 = smov 0  }
   0x2   :  { %s1179_s26 = smov 0   ;;  %s1181_s27 = smov 0  }
   0x3 LB: > { %s1196_s28 = sadd.s32 4294967295, %s1130_s27   ;;  %s934_s29 = sadd.s32 4294967294, %s1130_s27   ;;  %s1130_s27 = sphi %s1181_s27, %s1421_s27   ;;  %s1126_s26 = sphi %s1179_s26, %s1420_s26   ;;  %s1122_s25 = sphi %s1177_s25, %s1419_s25   ;;  %s1118_s24 = sphi %s1175_s24, %s1418_s24  }
   0x4   : > { %s1200_s30 = sadd.s32 1, %s1130_s27   ;;  %s179_s8 = sadd.s32 1, %s1126_s26 }
   0x5   : > { %s176_s9 = ssub.s32 %s1130_s27, %s1200_s30  ;;  %p189_p0 = scmp.ne.s32.totalorder %s1126_s26, %s1122_s25 }
   0x6   : > { %p177_p1 = scmp.eq.s32.totalorder %s176_s9, 0  ;;  %p190_p2 = scmp.eq.s32.totalorder %s1196_s28, 3 }
   0x7   : > { %p195_p3 = scmp.ne.s32.totalorder %s1122_s25, %s1118_s24  ;;  %p196_p4 = scmp.eq.s32.totalorder %s934_s29, 3 }
   0x8   : > { %s1211_s10 = scalar_select %p177_p1, %s1126_s26, %s179_s8  }
   0x9   : > { %p1213_p5 = por %p190_p2, %p189_p0  ;;  %p1217_p6 = por %p196_p4, %p195_p3 }
   0xa   : > { %p937_p7 = scmp.ge.s32.totalorder %s1130_s27, 1  ;;  %p241_p8 = scmp.lt.s32.totalorder %s1130_s27, 5 }
   0xc   : > { %p242_p9 = pnand %p937_p7, %p241_p8 }
   0xd   : > { %s939_s13 = sshll.u32 (!%p242_p9), %s1196_s28, 5  ;;  %v1132_v20 = vmov (!%p242_p9), 0   ;;  %v503_v42 = vld [vmem:[%s1410_s2] sm:$0xf] (!%p242_p9)  ;;  %v504_v43 = vld [vmem:[%s1410_s2 + $0x4] sm:$0xf] (!%p242_p9) }
   0xe   : > { %245 = sbr.rel (%p242_p9) target bundleno = 890 (0x37a), region = 48  ;;  %p274_p10 = scmp.lt.s32.totalorder (!%p242_p9), %s939_s13, 127  ;;  %454 = vmatprep.mubr.bf16.mxu0 (!%p242_p9), %v1132_v20  ;;  %1060 = vset.pattern.permute.xlu1 (!%p242_p9), %v1132_v20  ;;  %v505_v47 = vld [vmem:[%s1410_s2 + $0x8] sm:$0xf] (!%p242_p9)  ;;  %v506_v51 = vld [vmem:[%s1410_s2 + $0xc] sm:$0xf] (!%p242_p9) }
   0xf   : > { %700 = vmatprep.mubr.bf16.mxu1 (!%p242_p9), %v1132_v20  ;;  %513 = vperm.xlu1 (!%p242_p9), %1060, %v503_v42   ;;  %v507_v53 = vld [vmem:[%s1410_s2 + $0x10] sm:$0xf] (!%p242_p9)  ;;  %v508_v54 = vld [vmem:[%s1410_s2 + $0x14] sm:$0xf] (!%p242_p9)  ;;  %v509_v55 = vld [vmem:[%s1410_s2 + $0x18] sm:$0xf] (!%p242_p9) }
  0x10   : > { %v510_v56 = vld [vmem:[%s1410_s2 + $0x1c] sm:$0xf] (!%p242_p9)  ;;  %v725_v57 = vld [vmem:[%s1412_s4] sm:$0xf] (!%p242_p9)  ;;  %v726_v58 = vld [vmem:[%s1412_s4 + $0x4] sm:$0xf] (!%p242_p9) }
  0x11   : > { %v727_v59 = vld [vmem:[%s1412_s4 + $0x8] sm:$0xf] (!%p242_p9)  ;;  %v728_v60 = vld [vmem:[%s1412_s4 + $0xc] sm:$0xf] (!%p242_p9)  ;;  %v798_v61 = vld [vmem:[%s1414_s6] sm:$0x3] (!%p242_p9) }
  0x12   : > { %vm409_vm0 = vcmask (!%p242_p9), 261120   ;;  %vm661_vm1 = vcmask (!%p242_p9), 523264   ;;  %s270_s16 = sand.u32 (!%p242_p9), 1, %s1122_s25   ;;  %s966_s18 = sshll.u32 (!%p242_p9), %s1196_s28, 6 }
  0x13   : > { %525 = vperm.xlu1 (!%p242_p9), %1060, %v504_v43   ;;  %s1366_s23 = scalar_lea.hbm (!%p242_p9), %s1415_s7, %s966_s18  ;;  %s861_s29 = scalar_lea.sflag (!%p242_p9), [#allocation3], %s270_s16 }
  0x14   : > { %s1134_s28 = smov (!%p242_p9), [#allocation2]  }
  0x15   : > { %s1423_s13 = smov (!%p274_p10, %s939_s13), 127  ;;  %s1072_s9 = sshll.u32 %s1134_s28, 4  ;;  %s1073_s9 = int_to_ptr.vmem [resolvable:$false] %s1072_s9 }
  0x16   : > { %s940_s14 = sshll.u32 %s1423_s13, 3  ;;  %s1074_s13 = scalar_lea.vmem %s1073_s9, 128 }
  0x17   : > { %s1227_s17 = scalar_lea.vmem %s1408_s0, %s940_s14  ;;  %537 = vperm.xlu1 %1060, %v505_v47  }
  0x18   : > { %v281_v0 = vld [vmem:[%s1227_s17] sm:$0xff]  ;;  %v282_v2 = vld [vmem:[%s1227_s17 + $0x8] sm:$0xff]  ;;  %v283_v6 = vld [vmem:[%s1227_s17 + $0x10] sm:$0xff] }
  0x19   : > { %v297_v1 = vld [vmem:[%s1227_s17 + $0x80] sm:$0xff]  ;;  %v298_v4 = vld [vmem:[%s1227_s17 + $0x88] sm:$0xff]  ;;  %v299_v7 = vld [vmem:[%s1227_s17 + $0x90] sm:$0xff] }
  0x1a   : > { %v1008_v3 = vpack.i.bf16 %v281_v0, %v297_v1  ;;  %v1010_v5 = vpack.i.bf16 %v282_v2, %v298_v4  ;;  %v1012_v8 = vpack.i.bf16 %v283_v6, %v299_v7  ;;  %v284_v9 = vld [vmem:[%s1227_s17 + $0x18] sm:$0xff]  ;;  %v285_v12 = vld [vmem:[%s1227_s17 + $0x20] sm:$0xff]  ;;  %v286_v15 = vld [vmem:[%s1227_s17 + $0x28] sm:$0xff] }
  0x1b   : > { %v300_v10 = vld [vmem:[%s1227_s17 + $0x98] sm:$0xff]  ;;  %v301_v13 = vld [vmem:[%s1227_s17 + $0xa0] sm:$0xff]  ;;  %v302_v16 = vld [vmem:[%s1227_s17 + $0xa8] sm:$0xff]  ;;  %549 = vperm.xlu1 %1060, %v506_v51  }
  0x1c   : > { %1009 = vxpose.xlu0.b32.start [1/16] (narrow) %v1008_v3, 32  ;;  %v1014_v11 = vpack.i.bf16 %v284_v9, %v300_v10  ;;  %v1016_v14 = vpack.i.bf16 %v285_v12, %v301_v13  ;;  %v1018_v17 = vpack.i.bf16 %v286_v15, %v302_v16  ;;  %v287_v18 = vld [vmem:[%s1227_s17 + $0x30] sm:$0xff]  ;;  %v288_v22 = vld [vmem:[%s1227_s17 + $0x38] sm:$0xff]  ;;  %v289_v25 = vld [vmem:[%s1227_s17 + $0x40] sm:$0xff] }
  0x1d   : > { %v303_v19 = vld [vmem:[%s1227_s17 + $0xb0] sm:$0xff]  ;;  %v304_v23 = vld [vmem:[%s1227_s17 + $0xb8] sm:$0xff]  ;;  %v305_v26 = vld [vmem:[%s1227_s17 + $0xc0] sm:$0xff] }
  0x1e   : > { %v1020_v21 = vpack.i.bf16 %v287_v18, %v303_v19  ;;  %v1022_v24 = vpack.i.bf16 %v288_v22, %v304_v23  ;;  %v1024_v27 = vpack.i.bf16 %v289_v25, %v305_v26  ;;  %v290_v28 = vld [vmem:[%s1227_s17 + $0x48] sm:$0xff]  ;;  %v291_v31 = vld [vmem:[%s1227_s17 + $0x50] sm:$0xff]  ;;  %v292_v34 = vld [vmem:[%s1227_s17 + $0x58] sm:$0xff]  ;;  %v519_v23 = vlaneseq }
  0x1f   : > { %v306_v29 = vld [vmem:[%s1227_s17 + $0xc8] sm:$0xff]  ;;  %v307_v32 = vld [vmem:[%s1227_s17 + $0xd0] sm:$0xff]  ;;  %v308_v35 = vld [vmem:[%s1227_s17 + $0xd8] sm:$0xff]  ;;  %561 = vperm.xlu1 %1060, %v507_v53  }
  0x20   : > { %1011 = vxpose.xlu0.b32.cont [2/16] (narrow) %v1010_v5, 32  ;;  %v1026_v30 = vpack.i.bf16 %v290_v28, %v306_v29  ;;  %v1028_v33 = vpack.i.bf16 %v291_v31, %v307_v32  ;;  %v1030_v36 = vpack.i.bf16 %v292_v34, %v308_v35  ;;  %v293_v37 = vld [vmem:[%s1227_s17 + $0x60] sm:$0xff]  ;;  %v294_v40 = vld [vmem:[%s1227_s17 + $0x68] sm:$0xff]  ;;  %v295_v45 = vld [vmem:[%s1227_s17 + $0x70] sm:$0xff]  ;;  %v520_v25 = vshrl.u32 %v519_v23, 7 }
  0x21   : > { %v309_v38 = vld [vmem:[%s1227_s17 + $0xe0] sm:$0xff]  ;;  %v310_v41 = vld [vmem:[%s1227_s17 + $0xe8] sm:$0xff]  ;;  %v311_v46 = vld [vmem:[%s1227_s17 + $0xf0] sm:$0xff] }
  0x22   : > { %v1032_v39 = vpack.i.bf16 %v293_v37, %v309_v38  ;;  %v1034_v44 = vpack.i.bf16 %v294_v40, %v310_v41  ;;  %v1036_v48 = vpack.i.bf16 %v295_v45, %v311_v46  ;;  %v296_v49 = vld [vmem:[%s1227_s17 + $0x78] sm:$0xff]  ;;  %v1063_v15 = vld [vmem:[%s1409_s1 + $0x8] sm:$0xff]   ;;  %v1064_v16 = vld [vmem:[%s1409_s1 + $0x10] sm:$0xff]  }
  0x23   : > { %v312_v50 = vld [vmem:[%s1227_s17 + $0xf8] sm:$0xff]  ;;  %573 = vperm.xlu1 %1060, %v508_v54   ;;  %v1067_v23 = vld [vmem:[%s1411_s3 + $0x8] sm:$0xff]   ;;  %s938_s17 = sshll.u32 %s270_s16, 2 }
  0x24   : > { %1013 = vxpose.xlu0.b32.cont [3/16] (narrow) %v1012_v8, 32  ;;  %v1038_v52 = vpack.i.bf16 %v296_v49, %v312_v50  ;;  %s272_s19 = scalar_lea.vmem [#allocation2], %s938_s17 }
  0x25   : > { %s875_s20 = sshll.u32 %s272_s19, 4  ;;  %s1368_s20 = int_to_ptr.vmem [resolvable:$true] %s875_s20 }
  0x26   : > { %s1068_s8 = scalar_lea.vmem %s1368_s20, 64  ;;  %p1075_p0 = scmp.lt.s32.totalorder %s1368_s20, %s1073_s9 }
  0x27   : > { %585 = vperm.xlu1 %1060, %v509_v55   ;;  %p1069_p11 = scmp.ne.s32.totalorder %s1368_s20, %s1068_s8  ;;  %p1076_p1 = scmp.lt.s32.totalorder %s1074_s13, %s1068_s8 }
  0x28   : > { %1015 = vxpose.xlu0.b32.cont [4/16] (narrow) %v1014_v11, 32 }
  0x29   : > { %p1070_p12 = pnand %p1069_p11, %p1213_p5  ;;  %p1077_p2 = por %p1076_p1, %p1075_p0 }
  0x2b   : > { %597 = vperm.xlu1 %1060, %v510_v56   ;;  %p1071_p13 = pneg %p1070_p12 }
  0x2c   : > { %1017 = vxpose.xlu0.b32.cont [5/16] (narrow) %v1016_v14, 32  ;;  %v1062_v14 = vld [vmem:[%s1409_s1] sm:$0xff]  }
  0x2d   : > { %p1078_p3 = pnand %p1077_p2, %p1071_p13 }
  0x2f   : > { %731 = vperm.xlu1 %1060, %v725_v57  }
  0x30   : > { %1019 = vxpose.xlu0.b32.cont [6/16] (narrow) %v1018_v17, 32  ;;  %v1065_v17 = vld [vmem:[%s1409_s1 + $0x18] sm:$0xff]  }
  0x33   : > { %743 = vperm.xlu1 %1060, %v726_v58  }
  0x34   : > { %1021 = vxpose.xlu0.b32.cont [7/16] (narrow) %v1020_v21, 32  ;;  %v1133_v21 = vmov 839922192  }
  0x35   : > { %v517_v22 = vunpack.c.l.s4 %v1133_v21 }
  0x37   : > { %755 = vperm.xlu1 %1060, %v727_v59  }
  0x38   : > { %1023 = vxpose.xlu0.b32.cont [8/16] (narrow) %v1022_v24, 32  ;;  %v518_v24 = vunpack.c.0.s8 %v517_v22  ;;  %v1066_v22 = vld [vmem:[%s1411_s3] sm:$0xff]  }
  0x3b   : > { %767 = vperm.xlu1 %1060, %v728_v60  }
  0x3c   : > { %1025 = vxpose.xlu0.b32.cont [9/16] (narrow) %v1024_v27, 32  ;;  %v1323_v27 = vsub.s32 %v518_v24, %v520_v25 }
  0x3f   : > { %801 = vperm.xlu1 %1060, %v798_v61  }
  0x40   : > { %1027 = vxpose.xlu0.b32.cont [10/16] (narrow) %v1026_v30, 32 }
  0x44   : > { %1029 = vxpose.xlu0.b32.cont [11/16] (narrow) %v1028_v33, 32 }
  0x48   : > { %1031 = vxpose.xlu0.b32.cont [12/16] (narrow) %v1030_v36, 32 }
  0x4c   : > { %1033 = vxpose.xlu0.b32.cont [13/16] (narrow) %v1032_v39, 32 }
  0x50   : > { %1035 = vxpose.xlu0.b32.cont [14/16] (narrow) %v1034_v44, 32 }
  0x54   : > { %1037 = vxpose.xlu0.b32.cont [15/16] (narrow) %v1036_v48, 32 }
  0x58   : > { %1039 = vxpose.xlu0.b32.end [16/16] (narrow) %v1038_v52, 32 }
  0x81   : > { %1061 = vset.pattern.permute.xlu0 %v1132_v20 }
  0x8e   : > { %v514_v18 = vpop.permute.xlu1 %513 }
  0x8f   : > { %v522_v29 = vrot.slane %v514_v18, %v1323_v27 }
  0x92   : > { %v526_v19 = vpop.permute.xlu1 %525 }
  0x93   : > { %v534_v30 = vrot.slane %v526_v19, %v1323_v27 }
  0x95   : > { %v949_v34 = vcombine.low %v522_v29, %v534_v30 }
  0x96   : > { %v538_v26 = vpop.permute.xlu1 %537 }
  0x97   : > { %v546_v41 = vrot.slane %v538_v26, %v1323_v27 }
  0x9a   : > { %v550_v28 = vpop.permute.xlu1 %549 }
  0x9b   : > { %v558_v42 = vrot.slane %v550_v28, %v1323_v27 }
  0x9c   : > { %v1040_v62 = vpop.trf.xlu0 }
  0x9d   : > { %v1041_v0 = vunpack.i.l.bf16 %v1040_v62  ;;  %v1044_v1 = vunpack.i.h.bf16 %v1040_v62  ;;  %v950_v49 = vcombine.low %v546_v41, %v558_v42 }
  0x9e   : > { %v562_v37 = vpop.permute.xlu1 %561 }
  0x9f   : > { %v570_v55 = vrot.slane %v562_v37, %v1323_v27 }
  0xa0   : > { %v1045_v63 = vpop.trf.xlu0 }
  0xa1   : > { %v1046_v2 = vunpack.i.l.bf16 %v1045_v63  ;;  %v1049_v3 = vunpack.i.h.bf16 %v1045_v63 }
  0xa2   : > { %v574_v47 = vpop.permute.xlu1 %573 }
  0xa3   : > { %v378_v4 = vpack.c.bf16 %v1046_v2, %v1041_v0  ;;  %v377_v5 = vpack.c.bf16 %v1049_v3, %v1044_v1  ;;  %v582_v56 = vrot.slane %v574_v47, %v1323_v27 }
  0xa4   : > { %v1050_v6 = vpop.trf.xlu0 }
  0xa5   : > { %422 = vmatprep.subr.bf16.mxu0 %v378_v4  ;;  %v1054_v7 = vunpack.i.h.bf16 %v1050_v6  ;;  %v1051_v8 = vunpack.i.l.bf16 %v1050_v6  ;;  %v951_v63 = vcombine.low %v570_v55, %v582_v56 }
  0xa6   : > { %423 = vmatpush1.bf16.msra.mxu0 %v377_v5  ;;  %v586_v57 = vpop.permute.xlu1 %585 }
  0xa7   : > { %v594_v6 = vrot.slane %v586_v57, %v1323_v27 }
  0xa8   : > { %v1055_v9 = vpop.trf.xlu0 }
  0xa9   : > { %v1059_v10 = vunpack.i.h.bf16 %v1055_v9  ;;  %v1056_v11 = vunpack.i.l.bf16 %v1055_v9 }
  0xaa   : > { %v598_v4 = vpop.permute.xlu1 %597 }
  0xab   : > { %v380_v12 = vpack.c.bf16 %v1056_v11, %v1051_v8  ;;  %v379_v13 = vpack.c.bf16 %v1059_v10, %v1054_v7  ;;  %v606_v7 = vrot.slane %v598_v4, %v1323_v27 }
  0xad   : > { %424 = vmatprep.subr.bf16.mxu0 %v380_v12 }
  0xae   : > { %425 = vmatpush1.bf16.msra.mxu0 %v379_v13  ;;  %v952_v13 = vcombine.low %v594_v6, %v606_v7  ;;  %v732_v24 = vpop.permute.xlu1 %731 }
  0xaf   : > { %v740_v26 = vrot.slane %v732_v24, %v1323_v27 }
  0xb1   : > { %945 = vmatmul.mubr.msk.bf16.vlgmr.msra.gmra.mrb[0].mxu0 %vm409_vm0, %v1062_v14 }
  0xb2   : > { %464 = vmatprep.mubr.bf16.mxu0 %v1132_v20  ;;  %v744_v25 = vpop.permute.xlu1 %743 }
  0xb3   : > { %v752_v28 = vrot.slane %v744_v25, %v1323_v27 }
  0xb6   : > { %v756_v29 = vpop.permute.xlu1 %755 }
  0xb9   : > { %946 = vmatmul.mubr.msk.bf16.gmra.mrb[4].mxu0 %vm409_vm0, %v1063_v15 }
  0xba   : > { %474 = vmatprep.mubr.bf16.mxu0 %v1132_v20 }
  0xc1   : > { %947 = vmatmul.mubr.msk.bf16.gmra.mrb[8].mxu0 %vm409_vm0, %v1064_v16 }
  0xc2   : > { %484 = vmatprep.mubr.bf16.mxu0 %v1132_v20 }
  0xc9   : > { %948 = vmatmul.mubr.msk.bf16.gmra.mrb[12].mxu0 %vm409_vm0, %v1065_v17 }
 0x184   : > { %v456_v31 = vpop.f32.mrb[0].mxu0 }
 0x185   : > { %v458_v32 = vpop.f32.mrb[1].mxu0 }
 0x186   : > { %v460_v33 = vpop.f32.mrb[2].mxu0 }
 0x187   : > { %v495_v35 = vpack.c.bf16 %v460_v33, %v456_v31  ;;  %v462_v36 = vpop.f32.mrb[3].mxu0  ;;  %v957_v33 = vcombine.low %v740_v26, %v752_v28 }
 0x188   : > { %v496_v38 = vpack.c.bf16 %v462_v36, %v458_v32 }
 0x189   : > { %v631_v39 = vadd.bf16 %v949_v34, %v495_v35 }
 0x18a   : > { %v632_v40 = vadd.bf16 %v949_v34, %v496_v38  ;;  %v768_v38 = vpop.permute.xlu1 %767 }
 0x18b   : > { %v639_v46 = vmax.bf16 %v1132_v20, %v631_v39  ;;  %v776_v41 = vrot.slane %v768_v38, %v1323_v27 }
 0x18c   : > { %v466_v43 = vpop.f32.mrb[4].mxu0  ;;  %v640_v44 = vmax.bf16 %v1132_v20, %v632_v40  ;;  %v764_v40 = vrot.slane %v756_v29, %v1323_v27 }
 0x18d   : > { %v468_v45 = vpop.f32.mrb[5].mxu0 }
 0x18e   : > { %v470_v48 = vpop.f32.mrb[6].mxu0  ;;  %668 = vmatprep.subr.bf16.mxu1 %v640_v44  ;;  %v958_v47 = vcombine.low %v764_v40, %v776_v41  ;;  %v802_v55 = vpop.permute.xlu1 %801 }
 0x18f   : > { %v497_v50 = vpack.c.bf16 %v470_v48, %v466_v43  ;;  %v472_v51 = vpop.f32.mrb[7].mxu0  ;;  %669 = vmatpush1.bf16.msra.mxu1 %v639_v46 }
 0x190   : > { %v498_v52 = vpack.c.bf16 %v472_v51, %v468_v45 }
 0x191   : > { %v633_v53 = vadd.bf16 %v950_v49, %v497_v50 }
 0x192   : > { %v634_v54 = vadd.bf16 %v950_v49, %v498_v52 }
 0x193   : > { %v641_v61 = vmax.bf16 %v1132_v20, %v633_v53 }
 0x194   : > { %v476_v58 = vpop.f32.mrb[8].mxu0  ;;  %v642_v59 = vmax.bf16 %v1132_v20, %v634_v54  ;;  %v797_v54 = vld [vmem:[%s1413_s5] sm:$0x1] }
 0x195   : > { %v478_v60 = vpop.f32.mrb[9].mxu0 }
 0x196   : > { %v480_v62 = vpop.f32.mrb[10].mxu0  ;;  %670 = vmatprep.subr.bf16.mxu1 %v642_v59 }
 0x197   : > { %v499_v0 = vpack.c.bf16 %v480_v62, %v476_v58  ;;  %v482_v1 = vpop.f32.mrb[11].mxu0  ;;  %671 = vmatpush1.bf16.msra.mxu1 %v641_v61 }
 0x198   : > { %v500_v2 = vpack.c.bf16 %v482_v1, %v478_v60 }
 0x199   : > { %v635_v3 = vadd.bf16 %v951_v63, %v499_v0 }
 0x19a   : > { %v636_v5 = vadd.bf16 %v951_v63, %v500_v2 }
 0x19b   : > { %v643_v11 = vmax.bf16 %v1132_v20, %v635_v3 }
 0x19c   : > { %v486_v8 = vpop.f32.mrb[12].mxu0  ;;  %v644_v9 = vmax.bf16 %v1132_v20, %v636_v5 }
 0x19d   : > { %v488_v10 = vpop.f32.mrb[13].mxu0 }
 0x19e   : > { %v490_v12 = vpop.f32.mrb[14].mxu0  ;;  %672 = vmatprep.subr.bf16.mxu1 %v644_v9 }
 0x19f   : > { %v501_v14 = vpack.c.bf16 %v490_v12, %v486_v8  ;;  %v492_v15 = vpop.f32.mrb[15].mxu0  ;;  %673 = vmatpush1.bf16.msra.mxu1 %v643_v11 }
 0x1a0   : > { %v502_v16 = vpack.c.bf16 %v492_v15, %v488_v10 }
 0x1a1   : > { %v637_v17 = vadd.bf16 %v952_v13, %v501_v14 }
 0x1a2   : > { %v638_v18 = vadd.bf16 %v952_v13, %v502_v16 }
 0x1a3   : > { %v645_v21 = vmax.bf16 %v1132_v20, %v637_v17 }
 0x1a4   : > { %v646_v19 = vmax.bf16 %v1132_v20, %v638_v18 }
 0x1a6   : > { %674 = vmatprep.subr.bf16.mxu1 %v646_v19 }
 0x1a7   : > { %675 = vmatpush1.bf16.msra.mxu1 %v645_v21 }
 0x1aa   : > { %955 = vmatmul.mubr.msk.bf16.vlgmr.msra.gmra.mrb[0].mxu1 %vm661_vm1, %v1066_v22 }
 0x1ab   : > { %710 = vmatprep.mubr.bf16.mxu1 %v1132_v20 }
 0x1b2   : > { %956 = vmatmul.mubr.msk.bf16.gmra.mrb[4].mxu1 %vm661_vm1, %v1067_v23 }
 0x1b3   : > { %839 = vmatprep.mubr.bf16.mxu1 %v1132_v20 }
 0x27d   : > { %v702_v30 = vpop.f32.mrb[0].mxu1 }
 0x27e   : > { %v704_v31 = vpop.f32.mrb[1].mxu1 }
 0x27f   : > { %v706_v32 = vpop.f32.mrb[2].mxu1 }
 0x280   : > { %v721_v34 = vpack.c.bf16 %v706_v32, %v702_v30  ;;  %v708_v35 = vpop.f32.mrb[3].mxu1 }
 0x281   : > { %v722_v36 = vpack.c.bf16 %v708_v35, %v704_v31 }
 0x282   : > { %v789_v37 = vadd.bf16 %v957_v33, %v721_v34 }
 0x283   : > { %v790_v39 = vadd.bf16 %v957_v33, %v722_v36 }
 0x284   : > { %v793_v44 = vmax.bf16 %v1132_v20, %v789_v37 }
 0x285   : > { %v712_v42 = vpop.f32.mrb[4].mxu1  ;;  %v794_v43 = vmax.bf16 %v1132_v20, %v790_v39 }
 0x286   : > { %v714_v45 = vpop.f32.mrb[5].mxu1 }
 0x287   : > { %v716_v46 = vpop.f32.mrb[6].mxu1  ;;  %807 = vmatprep.subr.bf16.mxu1 %v794_v43 }
 0x288   : > { %v723_v48 = vpack.c.bf16 %v716_v46, %v712_v42  ;;  %v718_v49 = vpop.f32.mrb[7].mxu1  ;;  %808 = vmatpush1.bf16.msra.mxu1 %v793_v44 }
 0x289   : > { %v724_v50 = vpack.c.bf16 %v718_v49, %v714_v45 }
 0x28a   : > { %v791_v51 = vadd.bf16 %v958_v47, %v723_v48 }
 0x28b   : > { %v792_v52 = vadd.bf16 %v958_v47, %v724_v50 }
 0x28c   : > { %v795_v27 = vmax.bf16 %v1132_v20, %v791_v51 }
 0x28d   : > { %v796_v53 = vmax.bf16 %v1132_v20, %v792_v52 }
 0x28f   : > { %809 = vmatprep.subr.bf16.mxu1 %v796_v53 }
 0x290   : > { %810 = vmatpush1.bf16.msra.mxu1 %v795_v27 }
 0x293   : > { %959 = vmatmul.mubr.msk.bf16.vlgmr.msra.gmra.mrb[8].mxu1 %vm409_vm0, %v797_v54 }
 0x366   : > { %v841_v56 = vpop.f32.mrb[8].mxu1 }
 0x367   : > { %v842_v57 = vadd.f32 %v841_v56, %v802_v55  ;;  %v843_v58 = vpop.f32.mrb[9].mxu1 }
 0x368   : > { %v844_v59 = vadd.f32 %v843_v58, %v802_v55  ;;  %v845_v20 = vpop.f32.mrb[10].mxu1 }
 0x369   : > { %v846_v60 = vpop.f32.mrb[11].mxu1 }
 0x36a   : > { %v850_v61 = vcombine.low %v842_v57, %v844_v59 }
 0x36c   : > { %960 = vst.sshfl [vmem:[%s272_s19] sm:$0x33 pattern:$0x76325410] %v850_v61 }
 0x36d   : > { %1081 = shalt.err (!%p1078_p3)
}
 0x36e   : > { %s1082_s14 = scalar_lea.hbm %s1366_s23, 64  ;;  %s1086_s17 = scalar_lea.hbm %s1415_s7, 256 }
 0x36f   : > { %p1083_p4 = scmp.ne.s32.totalorder %s1366_s23, %s1082_s14  ;;  %p1087_p9 = scmp.lt.u32.totalorder %s1366_s23, %s1415_s7 }
 0x370   : > { %p1088_p10 = scmp.lt.u32.totalorder %s1086_s17, %s1082_s14  ;;  %p1090_p12 = scmp.lt.u32.totalorder %s1082_s14, %s1366_s23 }
 0x371   : > { %p1084_p7 = pnand %p1083_p4, %p1213_p5 }
 0x372   : > { %p1089_p11 = por %p1088_p10, %p1087_p9 }
 0x373   : > { %p1085_p8 = pneg %p1084_p7 }
 0x374   : > { %p1091_p13 = por %p1090_p12, %p1089_p11 }
 0x376   : > { %p1092_p0 = pnand %p1091_p13, %p1085_p8 }
 0x378   : > { %1095 = shalt.err (!%p1092_p0)
}
 0x379   : > { %967 = dma.vmem_to_hbm [thread:$0]  (%p1213_p5), %s1368_s20, 64, %s1366_s23, %s861_s29  }
 0x37a PF: > { %p973_p1 = scmp.ge.s32.totalorder %s1130_s27, 2  ;;  %s887_s21 = sand.u32 1, %s1118_s24  }
 0x37b   : > { %s888_s22 = scalar_lea.sflag [#allocation3], %s887_s21 }
 0x37c   : > { %p970_p2 = pnand %p973_p1, %p1217_p6 }
 0x37e   : > { %1113 = dma.done.wait (!%p970_p2), %s888_s22, 64  }
 0x37f   : > { %1115 = vsyncadd (!%p970_p2), %s888_s22, 4294967232  ;;  %p17_p3 = scmp.ge.s32.totalorder %s1200_s30, 6   ;;  %s1418_s24 = smov %s1122_s25 }
 0x380   : > { %s1419_s25 = smov %s1126_s26  ;;  %s1420_s26 = smov %s1211_s10 }
 0x381   : > { %s1421_s27 = smov %s1200_s30  ;;  %19 = sbr.rel (!%p17_p3) target bundleno = 3 (0x3), region = 83 }
 0x388   :  { %893 = vsyncpa [#allocation3], 1 }
 0x389   :  { %895 = vsyncpa [#allocation3 + $0x1], 1 }

</bundles_post_ra>
